<compile_context>
chip_gen: v6e
topology: v6e:2x2x1
jax: 0.10.0
libtpu: 0.0.40
codegen_flags: <defaults>
</compile_context>

<pallas_src>
import functools

import jax
import jax.numpy as jnp
from jax import lax
from jax.experimental import pallas as pl
from jax.experimental.pallas import tpu as pltpu

LANES = 128

# Main (numel % 128 == 0) path.
MAX_BLOCK_ROWS = 8192   # (8192, 128) f32 = 4 MiB per input per grid step.
CHUNK_ROWS = 256        # in-kernel accumulation chunk (128 KiB f32 per input).
MIN_GRID_STEPS = 4      # keep >= 2 steps so v7x megacore + double-buffering engage.

# Fallback (numel % 128 != 0) path: (1, n) view + in-kernel flat-index masking.
FLAT_BLOCK_COLS = 65536
FLAT_CHUNK_COLS = 2048

# Explicit scoped-VMEM limit: above v5e's 16 MiB default, well under v7x's
# 64 MiB physical per-TC capacity; covers the double-buffered 4 MiB tiles.
VMEM_LIMIT_BYTES = 40 << 20


def _round_up(x, m):
    return ((x + m - 1) // m) * m


def _l1_rows_kernel(p_ref, t_ref, o_ref, *, rows_total, block_rows, chunk_rows,
                    ragged):
    """Grid step i: (8,128) f32 partial sum of |p - t| over its (block_rows,128) tile."""
    step = pl.program_id(0)
    n_chunks = block_rows // chunk_rows

    # Only built when the grid is ragged (rows_total % block_rows != 0).  The
    # mask then runs on every step; per the perf review this is wall-clock
    # neutral (mem-bound, VALU slack), so we keep it simple rather than
    # pl.when-gating the last step only.
    row_iota = (
        lax.broadcasted_iota(jnp.int32, (chunk_rows, LANES), 0) if ragged else None)

    def chunk_partial(c, acc):
        r0 = pl.multiple_of(c * chunk_rows, chunk_rows)
        p = p_ref[pl.ds(r0, chunk_rows), :].astype(jnp.float32)
        t = t_ref[pl.ds(r0, chunk_rows), :].astype(jnp.float32)
        d = jnp.abs(p - t)
        if ragged:
            valid = rows_total - step * block_rows - c * chunk_rows
            d = jnp.where(row_iota < valid, d, 0.0)
        # Collapse the chunk with pure VPU adds along the leading axis into a
        # single vreg-shaped (8, 128) partial (no cross-lane reduce, no
        # block-sized intermediate).
        return acc + jnp.sum(d.reshape(chunk_rows // 8, 8, LANES), axis=0)

    acc = lax.fori_loop(0, n_chunks, chunk_partial,
                        jnp.zeros((8, LANES), jnp.float32))
    o_ref[...] = acc


def _l1_flat_kernel(p_ref, t_ref, o_ref, *, n_elems, block_cols, chunk_cols):
    """Pad-free path for numel % 128 != 0.

    Block = (1, block_cols) slice of the flat (1, n) view; elements past the
    true length are masked with the global flat index, so no host-side
    jnp.pad / extra HBM copy of the inputs is ever needed.
    """
    step = pl.program_id(0)
    n_chunks = block_cols // chunk_cols
    col_iota = lax.broadcasted_iota(jnp.int32, (1, chunk_cols), 1)

    def chunk_partial(c, acc):
        c0 = pl.multiple_of(c * chunk_cols, chunk_cols)
        p = p_ref[:, pl.ds(c0, chunk_cols)].astype(jnp.float32)
        t = t_ref[:, pl.ds(c0, chunk_cols)].astype(jnp.float32)
        d = jnp.abs(p - t)
        idx = col_iota + (step * block_cols + c * chunk_cols)  # global flat index
        d = jnp.where(idx < n_elems, d, 0.0)
        return acc + jnp.sum(d, axis=1, keepdims=True)

    s = lax.fori_loop(0, n_chunks, chunk_partial, jnp.zeros((1, 1), jnp.float32))
    # (8, 128)-aligned output block; the wrapper reads element [0, 0] per block.
    o_ref[...] = jnp.broadcast_to(s, (8, LANES))


def _l1_sum_rows(flat_p, flat_t):
    """Sum of |p - t| when numel is a multiple of 128 (zero-copy (rows,128) view)."""
    n = flat_p.size
    rows_total = n // LANES
    p2d = flat_p.reshape(rows_total, LANES)   # free: contiguous row-major view
    t2d = flat_t.reshape(rows_total, LANES)

    itemsize = min(flat_p.dtype.itemsize, flat_t.dtype.itemsize)
    row_align = max(8, 32 // itemsize)        # 8 (f32) / 16 (bf16) / 32 (8-bit)

    # Largest DMA-efficient tile that still leaves >= MIN_GRID_STEPS grid steps.
    # 8192 rows (4 MiB f32/input/step) satisfies the per-generation guidance
    # (v7x >= 8192, v6e 4096-8192, v5e bounded by the explicit VMEM limit), so
    # no pltpu.get_tpu_info() dispatch is needed.
    block_rows = min(MAX_BLOCK_ROWS,
                     _round_up(pl.cdiv(rows_total, MIN_GRID_STEPS), row_align))
    if block_rows > CHUNK_ROWS:
        block_rows = _round_up(block_rows, CHUNK_ROWS)
    chunk_rows = min(CHUNK_ROWS, block_rows)

    n_blocks = pl.cdiv(rows_total, block_rows)
    ragged = (rows_total % block_rows) != 0

    kernel = functools.partial(
        _l1_rows_kernel, rows_total=rows_total, block_rows=block_rows,
        chunk_rows=chunk_rows, ragged=ragged)

    partials = pl.pallas_call(
        kernel,
        out_shape=jax.ShapeDtypeStruct((n_blocks * 8, LANES), jnp.float32),
        grid_spec=pltpu.PrefetchScalarGridSpec(
            num_scalar_prefetch=0,
            grid=(n_blocks,),
            in_specs=[
                pl.BlockSpec((block_rows, LANES), lambda i: (i, 0)),
                pl.BlockSpec((block_rows, LANES), lambda i: (i, 0)),
            ],
            out_specs=pl.BlockSpec((8, LANES), lambda i: (i, 0)),
        ),
        compiler_params=pltpu.CompilerParams(
            dimension_semantics=("parallel",),   # each step owns its output block
            vmem_limit_bytes=VMEM_LIMIT_BYTES,
        ),
    )(p2d, t2d)

    # TODO(synk): the tiny epilogue reduce could be folded in-kernel via a 2-D
    # grid with an inner "arbitrary" axis; skipped since partials are ~KBs.
    return jnp.sum(partials, dtype=jnp.float32)


def _l1_sum_flat(flat_p, flat_t):
    """Sum of |p - t| when numel % 128 != 0, with NO padding / extra HBM copy."""
    n = flat_p.size
    p2d = flat_p.reshape(1, n)   # free view; ragged tail handled by masking
    t2d = flat_t.reshape(1, n)

    block_cols = min(FLAT_BLOCK_COLS, _round_up(n, FLAT_CHUNK_COLS))
    n_blocks = pl.cdiv(n, block_cols)

    kernel = functools.partial(
        _l1_flat_kernel, n_elems=n, block_cols=block_cols,
        chunk_cols=FLAT_CHUNK_COLS)

    partials = pl.pallas_call(
        kernel,
        out_shape=jax.ShapeDtypeStruct((n_blocks * 8, LANES), jnp.float32),
        grid_spec=pltpu.PrefetchScalarGridSpec(
            num_scalar_prefetch=0,
            grid=(n_blocks,),
            in_specs=[
                pl.BlockSpec((1, block_cols), lambda i: (0, i)),
                pl.BlockSpec((1, block_cols), lambda i: (0, i)),
            ],
            out_specs=pl.BlockSpec((8, LANES), lambda i: (i, 0)),
        ),
        compiler_params=pltpu.CompilerParams(
            dimension_semantics=("parallel",),
            vmem_limit_bytes=VMEM_LIMIT_BYTES,
        ),
    )(p2d, t2d)

    # Each block's scalar was splatted over its (8, 128) output tile.
    return jnp.sum(partials[::8, 0], dtype=jnp.float32)


def l1_loss(pred, target):
    """torch.nn.L1Loss (reduction='mean'): mean(|pred - target|)."""
    assert pred.shape == target.shape, "L1Loss expects matching shapes"
    out_dtype = jnp.promote_types(pred.dtype, target.dtype)
    n = pred.size
    if n == 0:
        # Matches torch: mean over an empty tensor is NaN.
        return jnp.array(jnp.nan, dtype=jnp.float32).astype(out_dtype)

    # Keep native dtype through pallas_call (bf16/8-bit inputs halve/quarter
    # the HBM traffic, which is the whole cost of this kernel); the kernels
    # accumulate in f32.
    flat_p = pred.reshape(-1)
    flat_t = target.reshape(-1)

    if n % LANES == 0:
        total = _l1_sum_rows(flat_p, flat_t)
    else:
        total = _l1_sum_flat(flat_p, flat_t)
    return (total / n).astype(out_dtype)


if __name__ == "__main__":
    key = jax.random.PRNGKey(0)
    k1, k2, k3, k4 = jax.random.split(key, 4)

    # NCHW-like tensors: numel % 128 == 0 -> zero-copy (rows, 128) fast path.
    pred = jax.random.normal(k1, (2, 4, 16, 16), dtype=jnp.float32)
    target = jax.random.normal(k2, (2, 4, 16, 16), dtype=jnp.float32)
    loss = l1_loss(pred, target)
    jax.block_until_ready(loss)
    ref = jnp.mean(jnp.abs(pred - target))
    assert jnp.allclose(loss, ref, rtol=1e-5, atol=1e-6), (loss, ref)

    # Odd-sized input: exercises the pad-free (1, n) path with in-kernel
    # flat-index masking (no extra HBM copy of either input).
    pred2 = jax.random.normal(k3, (3, 5, 7, 11), dtype=jnp.float32)
    target2 = jax.random.normal(k4, (3, 5, 7, 11), dtype=jnp.float32)
    loss2 = l1_loss(pred2, target2)
    jax.block_until_ready(loss2)
    ref2 = jnp.mean(jnp.abs(pred2 - target2))
    assert jnp.allclose(loss2, ref2, rtol=1e-5, atol=1e-6), (loss2, ref2)

    print("KERNEL_OK")
</pallas_src>

<mosaic_0001>
module attributes {stable_mosaic.version = 11 : i64} {
  func.func @_l1_rows_kernel(%arg0: i32, %arg1: memref<8x128xf32, #tpu.memory_space<vmem>>, %arg2: memref<8x128xf32, #tpu.memory_space<vmem>>, %arg3: memref<8x128xf32, #tpu.memory_space<vmem>>) attributes {dimension_semantics = [#tpu.dimension_semantics<parallel>], iteration_bounds = array<i64: 2>, scalar_prefetch = 0 : i64, scratch_operands = 0 : i64, tpu.core_type = #tpu.core_type<tc>, window_params = [{transform_indices = @transform_0, window_bounds = array<i64: 8, 128>}, {transform_indices = @transform_1, window_bounds = array<i64: 8, 128>}, {transform_indices = @transform_2, window_bounds = array<i64: 8, 128>}]} {
    %cst = arith.constant 0.000000e+00 : f32
    %0 = vector.broadcast %cst : f32 to vector<8x128xf32>
    %c0_i32 = arith.constant 0 : i32
    %c8_i32 = arith.constant 8 : i32
    %1 = arith.muli %c0_i32, %c8_i32 : i32
    %2 = tpu.assume_multiple %1, 8 : i32
    %3 = arith.index_cast %2 : i32 to index
    %c0 = arith.constant 0 : index
    %4 = vector.load %arg1[%3, %c0] : memref<8x128xf32, #tpu.memory_space<vmem>>, vector<8x128xf32>
    %5 = arith.index_cast %2 : i32 to index
    %c0_0 = arith.constant 0 : index
    %6 = vector.load %arg2[%5, %c0_0] : memref<8x128xf32, #tpu.memory_space<vmem>>, vector<8x128xf32>
    %7 = arith.subf %4, %6 : vector<8x128xf32>
    %8 = math.absf %7 : vector<8x128xf32>
    %9 = vector.shape_cast %8 : vector<8x128xf32> to vector<1x8x128xf32>
    %cst_1 = arith.constant dense<0.000000e+00> : vector<8x128xf32>
    %10 = vector.multi_reduction <add>, %9, %cst_1 [0] : vector<1x8x128xf32> to vector<8x128xf32>
    %11 = arith.addf %0, %10 : vector<8x128xf32>
    %c1_i32 = arith.constant 1 : i32
    %c0_2 = arith.constant 0 : index
    %c0_3 = arith.constant 0 : index
    %12 = vector.load %arg3[%c0_2, %c0_3] : memref<8x128xf32, #tpu.memory_space<vmem>>, vector<8x128xf32>
    tpu.vector_store %arg3[%c0_2, %c0_3], %11 {strides = array<i32>} : memref<8x128xf32, #tpu.memory_space<vmem>>, vector<8x128xf32>,
    return
  }
  func.func @transform_0(%arg0: i32) -> (i32, i32) {
    %c0_i32 = arith.constant 0 : i32
    %c0_i32_0 = arith.constant 0 : i32
    return %arg0, %c0_i32 : i32, i32
  }
  func.func @transform_1(%arg0: i32) -> (i32, i32) {
    %c0_i32 = arith.constant 0 : i32
    %c0_i32_0 = arith.constant 0 : i32
    return %arg0, %c0_i32 : i32, i32
  }
  func.func @transform_2(%arg0: i32) -> (i32, i32) {
    %c0_i32 = arith.constant 0 : i32
    %c0_i32_0 = arith.constant 0 : i32
    return %arg0, %c0_i32 : i32, i32
  }
}

</mosaic_0001>

<bundles_post_ra>
// kernel: tpu_custom_call.1
= control target key start
LH: loop header
LB: loop body
LE: loop exit
PB: predicated region body
PF: predicated region fallthrough
CT: control target
= control target key end

     0   :  { %7 = vsyncpa [#allocation3], 0  ;;  %s714_s0 = inlined_call_operand.hbm [shape: f32[16,128], index: 0, kind: input, shape index: {}]   ;;  %s715_s1 = inlined_call_operand.hbm [shape: f32[16,128], index: 1, kind: input, shape index: {}]   ;;  %s716_s2 = inlined_call_operand.hbm [shape: f32[16,128], index: 2, kind: output, shape index: {}]  }
   0x1   :  { %9 = vsyncpa [#allocation3 + $0x1], 0 }
   0x2   :  { %10 = vsyncpa [#allocation6], 0 }
   0x3   :  { %12 = vsyncpa [#allocation6 + $0x1], 0 }
   0x4   :  { %13 = vsyncpa [#allocation4], 0 }
   0x5   :  { %15 = vsyncpa [#allocation4 + $0x1], 0  ;;  %s520_s9 = smov 0   ;;  %s522_s10 = smov 0  }
   0x6   :  { %s524_s11 = smov 0   ;;  %s526_s12 = smov 0  }
   0x7 LB: > { %s541_s13 = sadd.s32 4294967295, %s500_s12   ;;  %s310_s14 = sadd.s32 4294967294, %s500_s12   ;;  %s500_s12 = sphi %s526_s12, %s735_s12   ;;  %s496_s11 = sphi %s524_s11, %s734_s11   ;;  %s492_s10 = sphi %s522_s10, %s733_s10   ;;  %s488_s9 = sphi %s520_s9, %s732_s9  }
   0x8   : > { %s545_s15 = sadd.s32 1, %s500_s12   ;;  %s28_s16 = sadd.s32 1, %s496_s11 }
   0x9   : > { %s25_s17 = ssub.s32 %s500_s12, %s545_s15  ;;  %p35_p0 = scmp.ne.s32.totalorder %s496_s11, %s492_s10 }
   0xa   : > { %p26_p1 = scmp.eq.s32.totalorder %s25_s17, 0  ;;  %p36_p2 = scmp.eq.s32.totalorder %s500_s12, 0 }
   0xb   : > { %p41_p3 = scmp.ne.s32.totalorder %s492_s10, %s488_s9  ;;  %p42_p4 = scmp.eq.s32.totalorder %s541_s13, 0 }
   0xc   : > { %s557_s18 = scalar_select %p26_p1, %s496_s11, %s28_s16  }
   0xd   : > { %p559_p5 = por %p36_p2, %p35_p0  ;;  %p563_p6 = por %p42_p4, %p41_p3 }
   0xe   : > { %p91_p7 = scmp.eq.s32.totalorder %s541_s13, 1  ;;  %p97_p8 = scmp.eq.s32.totalorder %s310_s14, 1 }
   0xf   : > { %s720_s20 = scalar_select %p563_p6, 1, 0 }
  0x10   : > { %p342_p10 = scmp.lt.s32.totalorder %s500_s12, 2  ;;  %p570_p11 = por %p91_p7, %p35_p0 }
  0x11   : > { %p574_p12 = por %p97_p8, %p41_p3  ;;  %s579_s23 = sand.u32 1, %s496_s11  }
  0x12   : > { %s721_s21 = scalar_select %p570_p11, 1, 0 }
  0x13   : > { %s722_s22 = scalar_select %p574_p12, 1, 0 }
  0x14   : > { %s314_s24 = sshll.u32 %s500_s12, 7  ;;  %s313_s25 = sshll.u32 %s579_s23, 3 }
  0x15   : > { %s588_s28 = scalar_lea.hbm %s714_s0, %s314_s24  ;;  %s121_s29 = scalar_lea.vmem [#allocation2], %s313_s25 }
  0x16   : > { %s128_s30 = sshll.u32 %s121_s29, 4  ;;  %p594_p13 = pnand %p342_p10, %p559_p5  ;;  %s598_s30 = int_to_ptr.vmem [resolvable:$true] %s128_s30 }
  0x17   : > { %s118_s4 = scalar_lea.sflag [#allocation3], %s579_s23  ;;  %s376_s5 = scalar_lea.hbm %s588_s28, 128 }
  0x18   : > { %p377_p2 = scmp.ne.s32.totalorder %s588_s28, %s376_s5  ;;  %p378_p3 = pneg %p594_p13 }
  0x19   : > { %s381_s8 = scalar_lea.hbm %s714_s0, 256  ;;  %p382_p5 = scmp.lt.s32.totalorder %s588_s28, %s714_s0 }
  0x1a   : > { %p379_p4 = pnand %p378_p3, %p377_p2  ;;  %p383_p8 = scmp.lt.s32.totalorder %s381_s8, %s376_s5 }
  0x1c   : > { %p380_p7 = pneg %p379_p4  ;;  %p384_p10 = por %p383_p8, %p382_p5 }
  0x1e   : > { %p385_p9 = pnand %p384_p10, %p380_p7 }
  0x20   : > { %388 = shalt.err (!%p385_p9)
}
  0x21   : > { %s389_s17 = scalar_lea.vmem %s598_s30, 128  ;;  %s502_s19 = smov [#allocation2]  }
  0x22   : > { %p390_p0 = scmp.ne.s32.totalorder %s598_s30, %s389_s17  ;;  %s394_s26 = sshll.u32 %s502_s19, 4  ;;  %s395_s26 = int_to_ptr.vmem [resolvable:$false] %s394_s26 }
  0x23   : > { %s396_s27 = scalar_lea.vmem %s395_s26, 256  ;;  %p397_p1 = scmp.lt.s32.totalorder %s598_s30, %s395_s26 }
  0x24   : > { %p392_p2 = pnand %p390_p0, %p378_p3  ;;  %p398_p12 = scmp.lt.s32.totalorder %s396_s27, %s389_s17 }
  0x26   : > { %p393_p4 = pneg %p392_p2  ;;  %p399_p11 = por %p398_p12, %p397_p1 }
  0x28   : > { %p400_p5 = pnand %p399_p11, %p393_p4 }
  0x2a   : > { %403 = shalt.err (!%p400_p5)
}
  0x2b   : > { %334 = dma.hbm_to_vmem [thread:$0]  (!%p594_p13), %s588_s28, 128, %s598_s30, %s118_s4  }
  0x2c   : > { %p724_p9 = scmp.lt.s32.totalorder %s500_s12, 3  ;;  %p725_p0 = scmp.ge.s32.totalorder %s500_s12, 1 }
  0x2d   : > { %s640_s7 = scalar_lea.hbm %s715_s1, %s314_s24  ;;  %s139_s8 = scalar_lea.vmem [#allocation5], %s313_s25 }
  0x2e   : > { %p631_p7 = pnand %p725_p0, %p724_p9  ;;  %s146_s14 = sshll.u32 %s139_s8, 4  ;;  %s147_s14 = int_to_ptr.vmem [resolvable:$true] %s146_s14 }
  0x2f   : > { %s136_s28 = scalar_lea.sflag [#allocation6], %s579_s23  ;;  %s404_s30 = scalar_lea.hbm %s640_s7, 128 }
  0x30   : > { %s726_s29 = scalar_select %p631_p7, 1, 0 }
  0x31   : > { %p405_p11 = scmp.ne.s32.totalorder %s640_s7, %s404_s30  ;;  %s409_s17 = scalar_lea.hbm %s715_s1, 256 }
  0x32   : > { %p410_p8 = scmp.lt.s32.totalorder %s640_s7, %s715_s1  ;;  %p411_p10 = scmp.lt.s32.totalorder %s409_s17, %s404_s30 }
  0x33   : > { %p407_p12 = pnand %p405_p11, %p378_p3 }
  0x34   : > { %p412_p2 = por %p411_p10, %p410_p8 }
  0x35   : > { %p408_p1 = pneg %p407_p12 }
  0x37   : > { %p413_p4 = pnand %p412_p2, %p408_p1 }
  0x39   : > { %416 = shalt.err (!%p413_p4)
}
  0x3a   : > { %s417_s25 = scalar_lea.vmem %s147_s14, 128  ;;  %s503_s23 = smov [#allocation5]  }
  0x3b   : > { %p418_p5 = scmp.ne.s32.totalorder %s147_s14, %s417_s25  ;;  %s422_s26 = sshll.u32 %s503_s23, 4  ;;  %s423_s26 = int_to_ptr.vmem [resolvable:$false] %s422_s26 }
  0x3c   : > { %s424_s27 = scalar_lea.vmem %s423_s26, 256  ;;  %p425_p11 = scmp.lt.s32.totalorder %s147_s14, %s423_s26 }
  0x3d   : > { %p420_p9 = pnand %p418_p5, %p378_p3  ;;  %p426_p12 = scmp.lt.s32.totalorder %s424_s27, %s417_s25 }
  0x3f   : > { %p421_p0 = pneg %p420_p9  ;;  %p427_p6 = por %p426_p12, %p425_p11 }
  0x41   : > { %p428_p7 = pnand %p427_p6, %p421_p0 }
  0x43   : > { %431 = shalt.err (!%p428_p7)
}
  0x44   : > { %337 = dma.hbm_to_vmem [thread:$0]  (!%p594_p13), %s640_s7, 128, %s147_s14, %s136_s28  }
  0x45   : > { %p727_p1 = scmp.ne.s32.totalorder %s726_s29, 0 }
  0x46   : > { %s666_s5 = sand.u32 (!%p727_p1), 1, %s492_s10   ;;  %p728_p3 = scmp.ne.s32.totalorder (!%p727_p1), %s720_s20, 0 }
  0x47   : > { %155 = sbr.rel (%p727_p1) target bundleno = 104 (0x68), region = 28  ;;  %s318_s6 = sshll.u32 (!%p727_p1), %s666_s5, 3 }
  0x48   : > { %s158_s8 = scalar_lea.sflag (!%p727_p1), [#allocation3], %s666_s5  ;;  %s161_s30 = scalar_lea.vmem (!%p727_p1), [#allocation2], %s318_s6 }
  0x4c   : > { %475 = dma.done.wait (%p728_p3), %s158_s8, 128  }
  0x4d   : > { %477 = vsyncadd (%p728_p3), %s158_s8, 4294967168  ;;  %s167_s3 = scalar_lea.sflag [#allocation6], %s666_s5  ;;  %s170_s7 = scalar_lea.vmem [#allocation5], %s318_s6 }
  0x4e   : > { %479 = dma.done.wait (%p728_p3), %s167_s3, 128  }
  0x4f   : > { %481 = vsyncadd (%p728_p3), %s167_s3, 4294967168  ;;  %v196_v0 = vld [vmem:[%s161_s30] sm:$0xff]  ;;  %v197_v1 = vld [vmem:[%s170_s7] sm:$0xff]  ;;  %s195_s29 = scalar_lea.vmem [#allocation7], %s318_s6  ;;  %s322_s28 = sshll.u32 %s541_s13, 7 }
  0x50   : > { %s217_s14 = sshll.u32 %s195_s29, 4  ;;  %v198_v2 = vsub.f32 %v196_v0, %v197_v1  ;;  %s215_s17 = scalar_lea.hbm %s716_s2, %s322_s28  ;;  %s218_s14 = int_to_ptr.vmem [resolvable:$true] %s217_s14 }
  0x51   : > { %s204_s24 = scalar_lea.sflag [#allocation4], %s666_s5  ;;  %s432_s19 = scalar_lea.vmem %s218_s14, 128 }
  0x52   : > { %v199_v3 = vand.u32 2147483647, %v198_v2  ;;  %p433_p6 = scmp.ne.s32.totalorder %s218_s14, %s432_s19  ;;  %p729_p13 = scmp.ne.s32.totalorder %s721_s21, 0 }
  0x53   : > { %s504_s20 = smov [#allocation7]  }
  0x54   : > { %202 = vst [vmem:[%s195_s29] sm:$0xff] %v199_v3  ;;  %p434_p7 = pnand %p433_p6, %p729_p13  ;;  %s436_s25 = sshll.u32 %s504_s20, 4  ;;  %s437_s25 = int_to_ptr.vmem [resolvable:$false] %s436_s25 }
  0x55   : > { %s438_s23 = scalar_lea.vmem %s437_s25, 256  ;;  %p439_p10 = scmp.lt.s32.totalorder %s218_s14, %s437_s25 }
  0x56   : > { %p435_p8 = pneg %p434_p7  ;;  %p440_p2 = scmp.lt.s32.totalorder %s438_s23, %s432_s19 }
  0x58   : > { %p441_p4 = por %p440_p2, %p439_p10 }
  0x5a   : > { %p442_p5 = pnand %p441_p4, %p435_p8 }
  0x5c   : > { %445 = shalt.err (!%p442_p5)
}
  0x5d   : > { %s446_s13 = scalar_lea.hbm %s215_s17, 128  ;;  %s450_s5 = scalar_lea.hbm %s716_s2, 256 }
  0x5e   : > { %p447_p9 = scmp.ne.s32.totalorder %s215_s17, %s446_s13  ;;  %p451_p12 = scmp.lt.s32.totalorder %s215_s17, %s716_s2 }
  0x5f   : > { %p452_p1 = scmp.lt.s32.totalorder %s450_s5, %s446_s13 }
  0x60   : > { %p448_p0 = pnand %p447_p9, %p729_p13 }
  0x61   : > { %p453_p3 = por %p452_p1, %p451_p12 }
  0x62   : > { %p449_p11 = pneg %p448_p0 }
  0x64   : > { %p454_p6 = pnand %p453_p3, %p449_p11 }
  0x66   : > { %457 = shalt.err (!%p454_p6)
}
  0x67   : > { %329 = dma.vmem_to_hbm [thread:$0]  (%p729_p13), %s218_s14, 128, %s215_s17, %s204_s24  }
  0x68 PF: > { %s229_s30 = sand.u32 1, %s488_s9   ;;  %p730_p7 = scmp.ne.s32.totalorder %s722_s22, 0 }
  0x69   : > { %p731_p8 = scmp.ge.s32.totalorder %s500_s12, 2  ;;  %s230_s3 = scalar_lea.sflag [#allocation4], %s229_s30 }
  0x6b   : > { %p339_p10 = pnand %p731_p8, %p730_p7 }
  0x6d   : > { %p340_p2 = pneg %p339_p10 }
  0x6f   : > { %483 = dma.done.wait (%p340_p2), %s230_s3, 128  }
  0x70   : > { %485 = vsyncadd (%p340_p2), %s230_s3, 4294967168  ;;  %p18_p4 = scmp.ge.s32.totalorder %s545_s15, 4   ;;  %s732_s9 = smov %s492_s10 }
  0x71   : > { %s733_s10 = smov %s496_s11  ;;  %s734_s11 = smov %s557_s18 }
  0x72   : > { %s735_s12 = smov %s545_s15  ;;  %20 = sbr.rel (!%p18_p4) target bundleno = 7 (0x7), region = 86 }
  0x77   :  { %235 = vsyncpa [#allocation3], 1 }
  0x78   :  { %237 = vsyncpa [#allocation3 + $0x1], 1 }
  0x79   :  { %238 = vsyncpa [#allocation6], 1 }
  0x7a   :  { %240 = vsyncpa [#allocation6 + $0x1], 1 }
  0x7b   :  { %241 = vsyncpa [#allocation4], 1 }
  0x7c   :  { %243 = vsyncpa [#allocation4 + $0x1], 1 }

</bundles_post_ra>
